<compile_context>
chip_gen: v5e
topology: v5e:2x2
jax: 0.10.0
libtpu: 0.0.40
codegen_flags: <defaults>
</compile_context>

<pallas_src>
import functools

import jax
import jax.numpy as jnp
from jax.experimental import pallas as pl
from jax.experimental.pallas import tpu as pltpu


def _round_up(x, m):
    return ((x + m - 1) // m) * m


def _gcn_kernel(x_ref, adj_ref, w_ref, b_ref, o_ref, t_ref, *, bt, f, adj_first):
    # x_ref  : (bt*f, E1)   bf16   current batch tile, batch folded into rows
    # adj_ref: (f, f)       bf16   resident across grid steps
    # w_ref  : (E1, E2p)    bf16   (E2 zero-padded to a multiple of 128), resident
    # b_ref  : (1, E2p)     f32    resident
    # o_ref  : (bt*f, E2p)  output dtype (lane-dense last dim)
    # t_ref  : VMEM scratch bf16; (bt*f, E1) if adj_first else (bt*f, E2p)
    adj = adj_ref[...]
    if adj_first:
        # Expanding layer: per batch element t[b] = adj @ x[b] (narrow E1
        # intermediate), then ONE fused (bt*f, E1) @ (E1, E2p) over the tile.
        for i in range(bt):
            r = i * f
            t = jnp.dot(adj, x_ref[pl.ds(r, f), :],
                        preferred_element_type=jnp.float32)
            t_ref[pl.ds(r, f), :] = t.astype(t_ref.dtype)
        out = jnp.dot(t_ref[...], w_ref[...],
                      preferred_element_type=jnp.float32)
        o_ref[...] = (out + b_ref[...]).astype(o_ref.dtype)
    else:
        # Dimension-reducing layer: ONE fused X @ W first, then per-batch adj.
        s = jnp.dot(x_ref[...], w_ref[...], preferred_element_type=jnp.float32)
        t_ref[...] = s.astype(t_ref.dtype)
        for i in range(bt):
            r = i * f
            out = jnp.dot(adj, t_ref[pl.ds(r, f), :],
                          preferred_element_type=jnp.float32)
            o_ref[pl.ds(r, f), :] = (out + b_ref[...]).astype(o_ref.dtype)


def gcn_forward(x, adj, weight, bias=None):
    """x: (B, F, E1), adj: (F, F), weight: (E1, E2), bias: (E2,) or None."""
    B, F, E1 = x.shape
    E2 = weight.shape[1]
    out_dtype = x.dtype

    # --- pad the output feature dim to a lane-dense multiple of 128 ------------
    E2p = _round_up(E2, 128)
    w_p = jnp.zeros((E1, E2p), dtype=jnp.bfloat16).at[:, :E2].set(
        weight.astype(jnp.bfloat16))
    b_p = jnp.zeros((1, E2p), dtype=jnp.float32)
    if bias is not None:
        b_p = b_p.at[0, :E2].set(bias.astype(jnp.float32))

    # --- batch tiling: >=2 parallel grid steps (megacore) when possible,
    #     batch folded into MXU rows to amortize per-grid-step overhead --------
    if B <= 1:
        num_tiles = 1
    else:
        num_tiles = min(B, max(2, pl.cdiv(B, 8)))
    bt = pl.cdiv(B, num_tiles)
    if num_tiles > 1 and (bt * F) % 8 != 0:
        num_tiles, bt = 1, B          # full-array block is always layout-legal
    Bp = num_tiles * bt
    rows = bt * F

    x_bf = x.astype(jnp.bfloat16)
    if Bp != B:
        x_bf = jnp.pad(x_bf, ((0, Bp - B), (0, 0), (0, 0)))
    x2d = x_bf.reshape(Bp * F, E1)            # batch folded into MXU rows
    adj_bf = adj.astype(jnp.bfloat16)

    # Reorder: adj @ x first whenever it is cheaper (E1 < padded E2).
    adj_first = E1 < E2p
    scratch_cols = E1 if adj_first else E2p

    if adj_first:
        flops = 2 * Bp * (F * F * E1 + F * E1 * E2p)
    else:
        flops = 2 * Bp * (F * E1 * E2p + F * F * E2p)
    bytes_accessed = (x2d.size * 2 + adj_bf.size * 2 + w_p.size * 2
                      + b_p.size * 4
                      + Bp * F * E2p * jnp.dtype(out_dtype).itemsize)

    kernel = functools.partial(_gcn_kernel, bt=bt, f=F, adj_first=adj_first)

    out2d = pl.pallas_call(
        kernel,
        out_shape=jax.ShapeDtypeStruct((Bp * F, E2p), out_dtype),
        grid_spec=pltpu.PrefetchScalarGridSpec(
            num_scalar_prefetch=0,
            grid=(num_tiles,),
            in_specs=[
                pl.BlockSpec((rows, E1), lambda i: (i, 0)),     # batch-row tile
                pl.BlockSpec((F, F), lambda i: (0, 0)),         # adj, resident
                pl.BlockSpec((E1, E2p), lambda i: (0, 0)),      # weight, resident
                pl.BlockSpec((1, E2p), lambda i: (0, 0)),       # bias, resident
            ],
            out_specs=pl.BlockSpec((rows, E2p), lambda i: (i, 0)),
            scratch_shapes=[pltpu.VMEM((rows, scratch_cols), jnp.bfloat16)],
        ),
        compiler_params=pltpu.CompilerParams(
            dimension_semantics=("parallel",),
        ),
        cost_estimate=pl.CostEstimate(
            flops=int(flops),
            transcendentals=0,
            bytes_accessed=int(bytes_accessed),
        ),
    )(x2d, adj_bf, w_p, b_p)

    # Unfold batch, drop the lane padding.
    return out2d.reshape(Bp, F, E2p)[:B, :, :E2]


def xavier_uniform(key, fan_in, fan_out, dtype=jnp.float32):
    limit = (6.0 / (fan_in + fan_out)) ** 0.5
    return jax.random.uniform(key, (fan_in, fan_out), dtype=dtype,
                              minval=-limit, maxval=limit)


if __name__ == "__main__":
    # Small deterministic problem: B=2 batches, F=16 graph nodes,
    # ninfeat=32, noutfeat=64, bias=True, dropout (eval mode -> identity).
    B, F, E1, E2 = 2, 16, 32, 64

    key = jax.random.PRNGKey(0)
    kx, kadj, kw = jax.random.split(key, 3)

    x = jax.random.normal(kx, (B, F, E1), dtype=jnp.float32)
    adj = jax.random.uniform(kadj, (F, F), dtype=jnp.float32)
    weight = xavier_uniform(kw, E1, E2)          # nn.init.xavier_uniform_
    bias = jnp.zeros((E2,), dtype=jnp.float32)   # torch.zeros(noutfeat)

    out = gcn_forward(x, adj, weight, bias)
    out = jax.block_until_ready(out)

    # Reference in plain f32 JAX (same einsum semantics as the PyTorch module).
    # Tolerance loosened vs. an f32 kernel because MXU operands are bf16.
    support_ref = jnp.einsum('bfx,xy->bfy', x, weight)
    out_ref = jnp.einsum('xy,bye->bxe', adj, support_ref) + bias
    assert out.shape == (B, F, E2)
    assert jnp.allclose(out, out_ref, atol=5e-2, rtol=5e-2), (
        float(jnp.max(jnp.abs(out - out_ref))))

    print("KERNEL_OK")
</pallas_src>

<mosaic_0001>
module attributes {stable_mosaic.version = 11 : i64} {
  func.func @_gcn_kernel(%arg0: i32, %arg1: memref<16x32xbf16, #tpu.memory_space<vmem>>, %arg2: memref<16x16xbf16, #tpu.memory_space<vmem>>, %arg3: memref<32x128xbf16, #tpu.memory_space<vmem>>, %arg4: memref<1x128xf32, #tpu.memory_space<vmem>>, %arg5: memref<16x128xf32, #tpu.memory_space<vmem>>, %arg6: memref<16x32xbf16, #tpu.memory_space<vmem>>) attributes {dimension_semantics = [#tpu.dimension_semantics<parallel>], iteration_bounds = array<i64: 2>, scalar_prefetch = 0 : i64, scratch_operands = 1 : i64, tpu.core_type = #tpu.core_type<tc>, window_params = [{transform_indices = @transform_0, window_bounds = array<i64: 16, 32>}, {pipeline_mode = #tpu.pipeline_mode<synchronous>, transform_indices = @transform_1, window_bounds = array<i64: 16, 16>}, {pipeline_mode = #tpu.pipeline_mode<synchronous>, transform_indices = @transform_2, window_bounds = array<i64: 32, 128>}, {pipeline_mode = #tpu.pipeline_mode<synchronous>, transform_indices = @transform_3, window_bounds = array<i64: 1, 128>}, {transform_indices = @transform_4, window_bounds = array<i64: 16, 128>}]} {
    %c0 = arith.constant 0 : index
    %c0_0 = arith.constant 0 : index
    %0 = vector.load %arg2[%c0, %c0_0] : memref<16x16xbf16, #tpu.memory_space<vmem>>, vector<16x16xbf16>
    %c0_1 = arith.constant 0 : index
    %c0_2 = arith.constant 0 : index
    %1 = vector.load %arg1[%c0_1, %c0_2] : memref<16x32xbf16, #tpu.memory_space<vmem>>, vector<16x32xbf16>
    %cst = arith.constant dense<0.000000e+00> : vector<16x32xf32>
    %2 = tpu.matmul %0, %1, %cst {dimension_numbers = #tpu.dot_dimension_numbers<[1], [0], [0], [1], [0, 0, 1, 1], [], []>} : vector<16x16xbf16>, vector<16x32xbf16>, vector<16x32xf32> -> vector<16x32xf32>
    %3 = arith.truncf %2 : vector<16x32xf32> to vector<16x32xbf16>
    %c0_3 = arith.constant 0 : index
    %c0_4 = arith.constant 0 : index
    %4 = vector.load %arg6[%c0_3, %c0_4] : memref<16x32xbf16, #tpu.memory_space<vmem>>, vector<16x32xbf16>
    tpu.vector_store %arg6[%c0_3, %c0_4], %3 {strides = array<i32>} : memref<16x32xbf16, #tpu.memory_space<vmem>>, vector<16x32xbf16>,
    %c0_5 = arith.constant 0 : index
    %c0_6 = arith.constant 0 : index
    %5 = vector.load %arg6[%c0_5, %c0_6] : memref<16x32xbf16, #tpu.memory_space<vmem>>, vector<16x32xbf16>
    %c0_7 = arith.constant 0 : index
    %c0_8 = arith.constant 0 : index
    %6 = vector.load %arg3[%c0_7, %c0_8] : memref<32x128xbf16, #tpu.memory_space<vmem>>, vector<32x128xbf16>
    %cst_9 = arith.constant dense<0.000000e+00> : vector<16x128xf32>
    %7 = tpu.matmul %5, %6, %cst_9 {dimension_numbers = #tpu.dot_dimension_numbers<[1], [0], [0], [1], [0, 0, 1, 1], [], []>} : vector<16x32xbf16>, vector<32x128xbf16>, vector<16x128xf32> -> vector<16x128xf32>
    %c0_10 = arith.constant 0 : index
    %c0_11 = arith.constant 0 : index
    %8 = vector.load %arg4[%c0_10, %c0_11] : memref<1x128xf32, #tpu.memory_space<vmem>>, vector<1x128xf32>
    %9 = vector.broadcast %8 : vector<1x128xf32> to vector<16x128xf32>
    %10 = arith.addf %7, %9 : vector<16x128xf32>
    %c0_12 = arith.constant 0 : index
    %c0_13 = arith.constant 0 : index
    %11 = vector.load %arg5[%c0_12, %c0_13] : memref<16x128xf32, #tpu.memory_space<vmem>>, vector<16x128xf32>
    tpu.vector_store %arg5[%c0_12, %c0_13], %10 {strides = array<i32>} : memref<16x128xf32, #tpu.memory_space<vmem>>, vector<16x128xf32>,
    return
  }
  func.func @transform_0(%arg0: i32) -> (i32, i32) {
    %c0_i32 = arith.constant 0 : i32
    %c0_i32_0 = arith.constant 0 : i32
    return %arg0, %c0_i32 : i32, i32
  }
  func.func @transform_1(%arg0: i32) -> (i32, i32) {
    %c0_i32 = arith.constant 0 : i32
    %c0_i32_0 = arith.constant 0 : i32
    %c0_i32_1 = arith.constant 0 : i32
    return %c0_i32, %c0_i32_0 : i32, i32
  }
  func.func @transform_2(%arg0: i32) -> (i32, i32) {
    %c0_i32 = arith.constant 0 : i32
    %c0_i32_0 = arith.constant 0 : i32
    %c0_i32_1 = arith.constant 0 : i32
    return %c0_i32, %c0_i32_0 : i32, i32
  }
  func.func @transform_3(%arg0: i32) -> (i32, i32) {
    %c0_i32 = arith.constant 0 : i32
    %c0_i32_0 = arith.constant 0 : i32
    %c0_i32_1 = arith.constant 0 : i32
    return %c0_i32, %c0_i32_0 : i32, i32
  }
  func.func @transform_4(%arg0: i32) -> (i32, i32) {
    %c0_i32 = arith.constant 0 : i32
    %c0_i32_0 = arith.constant 0 : i32
    return %arg0, %c0_i32 : i32, i32
  }
}

</mosaic_0001>

<bundles_post_ra>
// kernel: tpu_custom_call.1
= control target key start
LH: loop header
LB: loop body
LE: loop exit
PB: predicated region body
PF: predicated region fallthrough
CT: control target
= control target key end

     0   :  { %9 = vsyncpa [#allocation4], 0  ;;  %s913_s0 = inlined_call_operand.hbm [shape: bf16[32,32], index: 0, kind: input, shape index: {}]   ;;  %s914_s1 = inlined_call_operand.hbm [shape: bf16[16,16], index: 1, kind: input, shape index: {}]   ;;  %s915_s2 = inlined_call_operand.hbm [shape: bf16[32,128], index: 2, kind: input, shape index: {}]   ;;  %s916_s3 = inlined_call_operand.vmem [shape: f32[1,128], index: 3, kind: input, shape index: {}]   ;;  %s917_s4 = inlined_call_operand.hbm [shape: f32[32,128], index: 4, kind: output, shape index: {}]  }
   0x1   :  { %11 = vsyncpa [#allocation4 + $0x1], 0 }
   0x2   :  { %12 = vsyncpa [#allocation7], 0 }
   0x3   :  { %13 = vsyncpa [#allocation5], 0 }
   0x4   :  { %15 = vsyncpa [#allocation5 + $0x1], 0  ;;  %s759_s15 = smov 0   ;;  %s761_s16 = smov 0  }
   0x5   :  { %s763_s17 = smov 0   ;;  %s765_s18 = smov 0  }
   0x6 LB: > { %s780_s19 = sadd.s32 4294967295, %s726_s18   ;;  %s447_s20 = sadd.s32 4294967294, %s726_s18   ;;  %s726_s18 = sphi %s765_s18, %s927_s18   ;;  %s722_s17 = sphi %s763_s17, %s926_s17   ;;  %s718_s16 = sphi %s761_s16, %s925_s16   ;;  %s714_s15 = sphi %s759_s15, %s924_s15  }
   0x7   : > { %p41_p0 = scmp.ne.s32.totalorder %s718_s16, %s714_s15  ;;  %p42_p1 = scmp.eq.s32.totalorder %s780_s19, 0 }
   0x8   : > { %p128_p2 = scmp.eq.s32.totalorder %s780_s19, 1  ;;  %p134_p3 = scmp.eq.s32.totalorder %s447_s20, 1 }
   0x9   : > { %p789_p4 = por %p42_p1, %p41_p0  ;;  %p448_p5 = scmp.ge.s32.totalorder %s726_s18, 1 }
   0xa   : > { %p794_p6 = por %p134_p3, %p41_p0  ;;  %p141_p7 = scmp.lt.s32.totalorder %s726_s18, 3 }
   0xb   : > { %s152_s25 = sshll.u32 %s914_s1, 4  ;;  %s728_s27 = smov [#allocation6]   ;;  %s153_s25 = int_to_ptr.hbm [resolvable:$true] %s152_s25 }
   0xc   : > { %p802_p8 = pnand %p448_p5, %p141_p7  ;;  %s154_s28 = sshll.u32 %s728_s27, 4  ;;  %s155_s28 = int_to_ptr.vmem [resolvable:$true] %s154_s28 }
   0xd   : > { %s166_s5 = sshll.u32 %s915_s2, 4  ;;  %s729_s6 = smov 64   ;;  %s167_s5 = int_to_ptr.hbm [resolvable:$true] %s166_s5 }
   0xe   : > { %p506_p9 = pneg %p802_p8  ;;  %s730_s7 = smov 4  }
   0xf   : > { %s731_s8 = smov [#allocation8]   ;;  %s821_s10 = sadd.s32 1, %s726_s18  }
  0x10   : > { %p507_p10 = pnand %p506_p9, %p42_p1  ;;  %s168_s9 = sshll.u32 %s731_s8, 4  ;;  %s169_s9 = int_to_ptr.vmem [resolvable:$true] %s168_s9 }
  0x11   : > { %s28_s11 = sadd.s32 1, %s722_s17  ;;  %s25_s12 = ssub.s32 %s726_s18, %s821_s10 }
  0x12   : > { %509 = dma.hbm_to_vmem [thread:$0]  (!%p507_p10), %s153_s25, 128, %s155_s28, [#allocation7], %s729_s6, %s729_s6, %s730_s7  }
  0x13   : > { %512 = dma.hbm_to_vmem [thread:$0]  (!%p507_p10), %s167_s5, 256, %s169_s9, [#allocation7], %s729_s6, %s729_s6, %s730_s7  }
  0x14   : > { %p35_p12 = scmp.ne.s32.totalorder %s722_s17, %s718_s16  ;;  %p26_p13 = scmp.eq.s32.totalorder %s25_s12, 0 }
  0x15   : > { %p36_p0 = scmp.eq.s32.totalorder %s726_s18, 0  ;;  %p523_p5 = scmp.lt.s32.totalorder %s726_s18, 2 }
  0x16   : > { %p831_p3 = por %p128_p2, %p35_p12  ;;  %s185_s20 = sand.u32 1, %s722_s17  }
  0x17   : > { %s837_s14 = scalar_select %p26_p13, %s722_s17, %s28_s11  }
  0x18   : > { %p37_p7 = por %p36_p0, %p35_p12  ;;  %s452_s23 = sshll.u32 %s185_s20, 3 }
  0x19   : > { %s487_s24 = sshll.u32 %s726_s18, 3  ;;  %s189_s29 = scalar_lea.vmem [#allocation3], %s452_s23 }
  0x1a   : > { %s194_s28 = scalar_lea.hbm %s913_s0, %s487_s24  ;;  %s197_s30 = sshll.u32 %s189_s29, 4  ;;  %s198_s30 = int_to_ptr.vmem [resolvable:$true] %s197_s30 }
  0x1b   : > { %s195_s5 = sshll.u32 %s194_s28, 4  ;;  %p844_p2 = pnand %p523_p5, %p37_p7  ;;  %s196_s5 = int_to_ptr.hbm [resolvable:$true] %s195_s5 }
  0x1c   : > { %s186_s9 = scalar_lea.sflag [#allocation4], %s185_s20  ;;  %s626_s11 = sshra.s32 %s196_s5, 4  ;;  %s627_s11 = int_to_ptr.hbm [resolvable:$true] %s626_s11 }
  0x1d   : > { %s628_s12 = scalar_lea.hbm %s627_s11, 8  ;;  %p630_p10 = pneg %p844_p2 }
  0x1e   : > { %p629_p9 = scmp.ne.s32.totalorder %s627_s11, %s628_s12  ;;  %s633_s25 = scalar_lea.hbm %s913_s0, 16 }
  0x1f   : > { %p634_p0 = scmp.lt.s32.totalorder %s627_s11, %s913_s0  ;;  %p635_p5 = scmp.lt.s32.totalorder %s633_s25, %s628_s12 }
  0x20   : > { %p631_p12 = pnand %p630_p10, %p629_p9 }
  0x21   : > { %p636_p7 = por %p635_p5, %p634_p0 }
  0x22   : > { %p632_p13 = pneg %p631_p12 }
  0x24   : > { %p637_p11 = pnand %p636_p7, %p632_p13 }
  0x26   : > { %640 = shalt.err (!%p637_p11)
}
  0x27   : > { %516 = dma.hbm_to_vmem [thread:$0]  (!%p844_p2), %s196_s5, 128, %s198_s30, %s186_s9, %s729_s6, %s729_s6, %s730_s7  }
  0x28   : > { %209 = sbr.rel (%p802_p8) target bundleno = 336 (0x150), region = 36  ;;  %s864_s20 = sand.u32 (!%p802_p8), 1, %s718_s16  }
  0x29   : > { %s456_s29 = sshll.u32 (!%p802_p8), %s864_s20, 3  ;;  %s212_s11 = scalar_lea.sflag (!%p802_p8), [#allocation4], %s864_s20 }
  0x2a   : > { %s215_s12 = scalar_lea.vmem (!%p802_p8), [#allocation3], %s456_s29 }
  0x2d   : > { %701 = dma.done.wait (%p789_p4), %s212_s11, 128  }
  0x2e   : > { %703 = vsyncadd (%p789_p4), %s212_s11, 4294967168 }
  0x2f   : > { %705 = dma.done.wait (%p42_p1), [#allocation7], 384  }
  0x30   : > { %707 = vsyncadd (%p42_p1), [#allocation7], 4294966912  ;;  %v489_v0 = vld [vmem:[%s215_s12] sm:$0xff]  ;;  %v488_v1 = vld [vmem:[#allocation6] sm:$0xff]  ;;  %vm269_vm0 = vcmask 130048   ;;  %vm289_vm1 = vcmask 257024  }
  0x31   : > { %280 = vmatpush.bf16.msra.mxu0 %v489_v0  ;;  %v492_v2 = vld [vmem:[#allocation8 + $0x8] sm:$0xff]  ;;  %v491_v3 = vld [vmem:[#allocation8] sm:$0xff]  ;;  %vm319_vm2 = vcmask 261120   ;;  %s459_s21 = sshll.u32 %s864_s20, 4  ;;  %s493_s7 = sshll.u32 %s780_s19, 4 }
  0x32   : > { %329 = vmatpush.bf16.msra.mxu1 %v492_v2  ;;  %v565_v9 = vld [vmem:[%s916_s3] ss:$0 sm:$0xff]  ;;  %s351_s8 = scalar_lea.hbm %s917_s4, %s493_s7  ;;  %s250_s9 = scalar_lea.vmem [#allocation9], %s459_s21 }
  0x33   : > { %s352_s24 = sshll.u32 %s250_s9, 4  ;;  %s354_s23 = sshll.u32 %s351_s8, 4  ;;  %s353_s24 = int_to_ptr.vmem [resolvable:$true] %s352_s24  ;;  %s355_s23 = int_to_ptr.hbm [resolvable:$true] %s354_s23 }
  0x34   : > { %468 = vmatmul.msk.bf16.vlgmr.msra.gmra.mxu0 %vm269_vm0, %v488_v1  ;;  %s340_s25 = scalar_lea.sflag [#allocation5], %s864_s20  ;;  %s670_s27 = sshra.s32 %s355_s23, 4  ;;  %s671_s27 = int_to_ptr.hbm [resolvable:$true] %s670_s27 }
  0x35   : > { %s672_s19 = scalar_lea.hbm %s671_s27, 16  ;;  %s676_s11 = scalar_lea.hbm %s917_s4, 32 }
  0x36   : > { %330 = vmatpush.bf16.msra.mxu1 %v491_v3  ;;  %p673_p1 = scmp.ne.s32.totalorder %s671_s27, %s672_s19  ;;  %p677_p11 = scmp.lt.s32.totalorder %s671_s27, %s917_s4 }
  0x37   : > { %p678_p2 = scmp.lt.s32.totalorder %s676_s11, %s672_s19 }
  0x38   : > { %p674_p4 = pnand %p673_p1, %p831_p3 }
  0x39   : > { %p679_p9 = por %p678_p2, %p677_p11 }
  0x3a   : > { %p675_p8 = pneg %p674_p4 }
  0x3c   : > { %p680_p10 = pnand %p679_p9, %p675_p8 }
  0xb1   : > { %v282_v4 = vpop.f32.mrf.mxu0 }
  0xb2   : > { %v287_v5 = vpack.c.bf16 %v282_v4, %v282_v4 }
  0xb4   : > { %290 = vst.msk [vmem:[#allocation2] sm:$0xf] %vm289_vm1, %v287_v5 }
  0xb9   : > { %v284_v6 = vpop.f32.mrf.mxu0 }
  0xba   : > { %v288_v7 = vpack.c.bf16 %v284_v6, %v284_v6 }
  0xbc   : > { %291 = vst.msk [vmem:[#allocation2 + $0x4] sm:$0xf] %vm289_vm1, %v288_v7 }
  0xc3   : > { %v490_v8 = vld [vmem:[#allocation2] sm:$0xff] }
  0xc4   : > { %481 = vmatmul.msk.bf16.vlgmr.msra.gmra.mxu1 %vm319_vm2, %v490_v8 }
 0x141   : > { %v332_v10 = vpop.f32.mrf.mxu1 }
 0x142   : > { %v333_v11 = vadd.f32 %v565_v9, %v332_v10 }
 0x144   : > { %337 = vst [vmem:[%s250_s9] sm:$0xff] %v333_v11 }
 0x149   : > { %v334_v12 = vpop.f32.mrf.mxu1 }
 0x14a   : > { %v335_v13 = vadd.f32 %v565_v9, %v334_v12 }
 0x14c   : > { %338 = vst [vmem:[%s250_s9 + $0x8] sm:$0xff] %v335_v13 }
 0x14d   : > { %683 = shalt.err (!%p680_p10)
}
 0x14e   : > { %s732_s20 = smov 128   ;;  %s733_s26 = smov 8  }
 0x14f   : > { %504 = dma.vmem_to_hbm [thread:$0]  (%p831_p3), %s353_s24, 256, %s355_s23, %s340_s25, %s732_s20, %s732_s20, %s733_s26  }
 0x150 PF: > { %s369_s6 = sand.u32 1, %s714_s15   ;;  %p923_p12 = scmp.ge.s32.totalorder %s726_s18, 2 }
 0x151   : > { %s370_s7 = scalar_lea.sflag [#allocation5], %s369_s6 }
 0x152   : > { %p518_p13 = pnand %p923_p12, %p794_p6 }
 0x154   : > { %p519_p0 = pneg %p518_p13 }
 0x156   : > { %709 = dma.done.wait (%p519_p0), %s370_s7, 256  }
 0x157   : > { %711 = vsyncadd (%p519_p0), %s370_s7, 4294967040  ;;  %p18_p5 = scmp.ge.s32.totalorder %s821_s10, 4   ;;  %s924_s15 = smov %s718_s16 }
 0x158   : > { %s925_s16 = smov %s722_s17  ;;  %s926_s17 = smov %s837_s14 }
 0x159   : > { %s927_s18 = smov %s821_s10  ;;  %20 = sbr.rel (!%p18_p5) target bundleno = 6 (0x6), region = 89 }
 0x15e   :  { %376 = vsyncpa [#allocation4], 1 }
 0x15f   :  { %378 = vsyncpa [#allocation4 + $0x1], 1 }
 0x160   :  { %379 = vsyncpa [#allocation7], 1 }
 0x161   :  { %380 = vsyncpa [#allocation5], 1 }
 0x162   :  { %382 = vsyncpa [#allocation5 + $0x1], 1 }

</bundles_post_ra>
